<compile_context>
chip_gen: v6e
topology: v6e:2x2x1
jax: 0.10.0
libtpu: 0.0.40
codegen_flags: <defaults>
</compile_context>

<pallas_src>
import functools

import jax
import jax.numpy as jnp
from jax.experimental import pallas as pl
from jax.experimental.pallas import tpu as pltpu


_MXU = 256  # v6e/v7x MXU is 2x256x256; align K and per-head slabs to x256.


def _round_up(x, m):
    return ((x + m - 1) // m) * m


def _softplus(y):
    # Matches nn.Softplus(beta=1, threshold=20).
    return jnp.where(y > 20.0, y, jnp.log1p(jnp.exp(jnp.minimum(y, 20.0))))


# --------------------------------------------------------------------------
# Kernels
# --------------------------------------------------------------------------
def _vmf_kernel(x_ref, w_ref, b_ref, o_ref, *, pass_pad):
    """Single-K fast path: sigmoid -> one bf16 MXU matmul (f32 acc) -> bias ->
    softplus only on the lane-aligned stddev slab (two static-slice stores)."""
    xs = jax.nn.sigmoid(x_ref[...]).astype(jnp.bfloat16)
    y = jnp.dot(xs, w_ref[...], preferred_element_type=jnp.float32) + b_ref[...]
    o_ref[:, :pass_pad] = y[:, :pass_pad]            # inducing pts + mean
    o_ref[:, pass_pad:] = _softplus(y[:, pass_pad:])  # stddev slab only


def _vmf_kernel_ktiled(x_ref, w_ref, b_ref, o_ref, acc_ref, *, pass_pad):
    """K-tiled path (weights too big for one VMEM block): f32 accumulator,
    bias + softplus epilogue on the last K step."""
    k = pl.program_id(1)

    @pl.when(k == 0)
    def _():
        acc_ref[...] = jnp.zeros_like(acc_ref)

    xs = jax.nn.sigmoid(x_ref[...]).astype(jnp.bfloat16)
    acc_ref[...] += jnp.dot(xs, w_ref[...], preferred_element_type=jnp.float32)

    @pl.when(k == pl.num_programs(1) - 1)
    def _():
        y = acc_ref[...] + b_ref[...]
        o_ref[:, :pass_pad] = y[:, :pass_pad]
        o_ref[:, pass_pad:] = _softplus(y[:, pass_pad:])


# --------------------------------------------------------------------------
# One-time parameter packing (do NOT call per forward step)
# --------------------------------------------------------------------------
def pack_params(params, *, in_features, num_tasks, num_features, num_inducing,
                block_k=None, max_weight_block_bytes=16 << 20):
    """Pack the three nn.Linear heads into one lane-dense bf16 weight matrix
    and one f32 bias row, padded so every slab boundary is MXU/lane aligned.
    Column layout: [ip | mean | pad ... | stddev | pad]."""
    out_ip = num_features * num_inducing
    out_mf = num_tasks * num_inducing
    out_lin = out_ip + out_mf                       # passthrough heads
    pass_pad = _round_up(out_lin, _MXU)
    sd_pad = _round_up(out_mf, _MXU)
    out_pad = pass_pad + sd_pad

    k_align = _round_up(in_features, _MXU)
    if block_k is None:
        # keep each weight block under ~16 MiB bf16 (fits v7x's 64 MiB VMEM
        # comfortably with double-buffered x/out tiles on top)
        nk = max(1, -(-(k_align * out_pad * 2) // max_weight_block_bytes))
        block_k = _round_up(-(-k_align // nk), _MXU)
    k_pad = _round_up(k_align, block_k)

    w = jnp.zeros((k_pad, out_pad), jnp.float32)
    w = w.at[:in_features, :out_ip].set(params["w_ip"].T)
    w = w.at[:in_features, out_ip:out_lin].set(params["w_mu"].T)
    w = w.at[:in_features, pass_pad:pass_pad + out_mf].set(params["w_sd"].T)

    b = jnp.zeros((1, out_pad), jnp.float32)
    b = b.at[0, :out_ip].set(params["b_ip"])
    b = b.at[0, out_ip:out_lin].set(params["b_mu"])
    b = b.at[0, pass_pad:pass_pad + out_mf].set(params["b_sd"])

    meta = dict(in_features=in_features, num_tasks=num_tasks,
                num_features=num_features, num_inducing=num_inducing,
                out_ip=out_ip, out_mf=out_mf, out_lin=out_lin,
                pass_pad=pass_pad, sd_pad=sd_pad, out_pad=out_pad,
                k_pad=k_pad, block_k=block_k)
    return {"w": w.astype(jnp.bfloat16), "b": b, "meta": meta}


# --------------------------------------------------------------------------
# Forward
# --------------------------------------------------------------------------
def variational_mean_field_forward(x, packed, *, block_n=None):
    """x: (N, in_features) f32; packed: output of pack_params.
    Returns (inducing_points (N,M,F), mean (T,N,M), stddev (T,N,M))."""
    w, b, m = packed["w"], packed["b"], packed["meta"]
    n, in_features = x.shape
    assert in_features == m["in_features"]

    k_pad, block_k = m["k_pad"], m["block_k"]
    out_pad, pass_pad = m["out_pad"], m["pass_pad"]
    out_ip, out_mf, out_lin = m["out_ip"], m["out_mf"], m["out_lin"]
    num_tasks, num_features, num_inducing = (
        m["num_tasks"], m["num_features"], m["num_inducing"])
    nk = k_pad // block_k

    # --- batch tile: fixed fat blocks, >=2 grid steps when possible (v7x) ---
    if block_n is None:
        if n <= 16:
            block_n = max(8, _round_up(n, 8))
        elif n <= 1024:
            block_n = _round_up(_round_up(n, 16) // 2, 8)   # 2 megacore tiles
        else:
            block_n = 512
        # keep x/out/acc tiles within a conservative VMEM budget
        while block_n > 8 and block_n * (out_pad * 12 + block_k * 8) > (24 << 20):
            block_n = max(8, _round_up(block_n // 2, 8))
    assert block_n % 8 == 0
    n_pad = _round_up(n, block_n)
    grid_n = n_pad // block_n

    x_p = jnp.pad(x, ((0, n_pad - n), (0, k_pad - in_features)))
    # padded x columns see sigmoid(0)=0.5 but matching weight rows are 0.

    # --- explicit VMEM budget (default scoped limit: 16 MiB v5e, 32 MiB v6e/v7x)
    w_bytes = block_k * out_pad * 2 * (1 if nk == 1 else 2)
    b_bytes = 8 * out_pad * 4
    x_bytes = 2 * block_n * block_k * 4
    o_bytes = 2 * block_n * out_pad * 4
    acc_bytes = 0 if nk == 1 else block_n * out_pad * 4
    vmem_limit = int((w_bytes + b_bytes + x_bytes + o_bytes + acc_bytes) * 1.25)
    vmem_limit = min(100 << 20, max(32 << 20, vmem_limit + (2 << 20)))

    cost = pl.CostEstimate(
        flops=2 * n_pad * k_pad * out_pad,
        transcendentals=n_pad * (k_pad + 2 * (out_pad - pass_pad)),
        bytes_accessed=(n_pad * k_pad * 4 + k_pad * out_pad * 2
                        + out_pad * 4 + n_pad * out_pad * 4),
    )

    if nk == 1:
        kernel = functools.partial(_vmf_kernel, pass_pad=pass_pad)
        grid = (grid_n,)
        in_specs = [
            pl.BlockSpec((block_n, k_pad), lambda i: (i, 0)),
            # grid-invariant -> single-buffer to halve their VMEM footprint
            pl.BlockSpec((k_pad, out_pad), lambda i: (0, 0),
                         pipeline_mode=pl.Buffered(1)),
            pl.BlockSpec((1, out_pad), lambda i: (0, 0),
                         pipeline_mode=pl.Buffered(1)),
        ]
        out_specs = pl.BlockSpec((block_n, out_pad), lambda i: (i, 0))
        scratch = []
        dims = ("parallel",)
    else:
        kernel = functools.partial(_vmf_kernel_ktiled, pass_pad=pass_pad)
        grid = (grid_n, nk)
        in_specs = [
            pl.BlockSpec((block_n, block_k), lambda i, k: (i, k)),
            pl.BlockSpec((block_k, out_pad), lambda i, k: (k, 0)),
            pl.BlockSpec((1, out_pad), lambda i, k: (0, 0),
                         pipeline_mode=pl.Buffered(1)),
        ]
        out_specs = pl.BlockSpec((block_n, out_pad), lambda i, k: (i, 0))
        scratch = [pltpu.VMEM((block_n, out_pad), jnp.float32)]
        dims = ("parallel", "arbitrary")

    out_flat = pl.pallas_call(
        kernel,
        out_shape=jax.ShapeDtypeStruct((n_pad, out_pad), jnp.float32),
        grid_spec=pltpu.PrefetchScalarGridSpec(
            num_scalar_prefetch=0,
            grid=grid,
            in_specs=in_specs,
            out_specs=out_specs,
            scratch_shapes=scratch,
        ),
        compiler_params=pltpu.CompilerParams(
            dimension_semantics=dims,
            vmem_limit_bytes=vmem_limit),
        cost_estimate=cost,
    )(x_p, w, b)

    # --- glue: strip padding, split heads, match PyTorch return layouts -----
    inducing_points = out_flat[:n, :out_ip].reshape(n, num_inducing, num_features)
    variational_mean = out_flat[:n, out_ip:out_lin].reshape(
        n, num_tasks, num_inducing)
    variational_stddev = out_flat[:n, pass_pad:pass_pad + out_mf].reshape(
        n, num_tasks, num_inducing)
    # TODO(synk): for very large T*N*M, emit mean/stddev in (T,N,M) directly
    # from the kernel (per-task 128-aligned column slices) instead of this
    # XLA transpose; kept as glue to preserve the single lane-dense output.
    return (inducing_points,
            jnp.transpose(variational_mean, (1, 0, 2)),
            jnp.transpose(variational_stddev, (1, 0, 2)))


# --------------------------------------------------------------------------
# Param init + pure-JAX reference (mirrors the PyTorch module)
# --------------------------------------------------------------------------
def _xavier_normal(key, out_f, in_f):
    std = jnp.sqrt(2.0 / (in_f + out_f)).astype(jnp.float32)
    return jax.random.normal(key, (out_f, in_f), dtype=jnp.float32) * std


def init_params(key, in_features, num_tasks, num_features, num_inducing):
    out_ip = num_features * num_inducing
    out_mf = num_tasks * num_inducing
    k1, k2, k3 = jax.random.split(key, 3)
    return {
        "w_ip": _xavier_normal(k1, out_ip, in_features),
        "b_ip": jnp.zeros((out_ip,), jnp.float32),
        "w_mu": _xavier_normal(k2, out_mf, in_features),
        "b_mu": jnp.zeros((out_mf,), jnp.float32),
        "w_sd": _xavier_normal(k3, out_mf, in_features),
        "b_sd": jnp.zeros((out_mf,), jnp.float32),
    }


def _reference_forward(x, params, *, num_tasks, num_features, num_inducing):
    n = x.shape[0]
    xs = jax.nn.sigmoid(x)
    ip = xs @ params["w_ip"].T + params["b_ip"]
    mu = xs @ params["w_mu"].T + params["b_mu"]
    sd = jax.nn.softplus(xs @ params["w_sd"].T + params["b_sd"])
    ip = ip.reshape(n, num_inducing, num_features)
    mu = mu.reshape(n, num_tasks, num_inducing).transpose(1, 0, 2)
    sd = sd.reshape(n, num_tasks, num_inducing).transpose(1, 0, 2)
    return ip, mu, sd


if __name__ == "__main__":
    key = jax.random.PRNGKey(0)
    TOL = dict(atol=2e-2, rtol=2e-2)   # bf16 matmul operands inside the kernel

    # --- case 1: tiny shapes -> single-K fast path ---------------------------
    N, IN_F, T, F, M = 12, 32, 2, 4, 8
    k1, k2 = jax.random.split(key)
    x = jax.random.normal(k1, (N, IN_F), dtype=jnp.float32)
    params = init_params(k2, IN_F, T, F, M)
    packed = pack_params(params, in_features=IN_F, num_tasks=T,
                         num_features=F, num_inducing=M)
    ip, mu, sd = jax.block_until_ready(variational_mean_field_forward(x, packed))
    ip_r, mu_r, sd_r = _reference_forward(x, params, num_tasks=T,
                                          num_features=F, num_inducing=M)
    assert ip.shape == (N, M, F)
    assert mu.shape == (T, N, M)
    assert sd.shape == (T, N, M)
    assert jnp.allclose(ip, ip_r, **TOL)
    assert jnp.allclose(mu, mu_r, **TOL)
    assert jnp.allclose(sd, sd_r, **TOL)

    # --- case 2: force the K-tiled accumulator path ---------------------------
    N2, IN_F2 = 24, 384            # k_pad = 512 -> two 256-wide K tiles
    k3, k4 = jax.random.split(k2)
    x2 = jax.random.normal(k3, (N2, IN_F2), dtype=jnp.float32)
    params2 = init_params(k4, IN_F2, T, F, M)
    packed2 = pack_params(params2, in_features=IN_F2, num_tasks=T,
                          num_features=F, num_inducing=M, block_k=256)
    ip2, mu2, sd2 = jax.block_until_ready(
        variational_mean_field_forward(x2, packed2))
    ip2_r, mu2_r, sd2_r = _reference_forward(x2, params2, num_tasks=T,
                                             num_features=F, num_inducing=M)
    assert jnp.allclose(ip2, ip2_r, **TOL)
    assert jnp.allclose(mu2, mu2_r, **TOL)
    assert jnp.allclose(sd2, sd2_r, **TOL)

    print("KERNEL_OK")
</pallas_src>

<mosaic_0001>
module attributes {stable_mosaic.version = 11 : i64} {
  func.func @_vmf_kernel(%arg0: i32, %arg1: memref<16x256xf32, #tpu.memory_space<vmem>>, %arg2: memref<256x512xbf16, #tpu.memory_space<vmem>>, %arg3: memref<1x512xf32, #tpu.memory_space<vmem>>, %arg4: memref<16x512xf32, #tpu.memory_space<vmem>>) attributes {dimension_semantics = [#tpu.dimension_semantics<parallel>], iteration_bounds = array<i64: 1>, scalar_prefetch = 0 : i64, scratch_operands = 0 : i64, tpu.core_type = #tpu.core_type<tc>, window_params = [{transform_indices = @transform_0, window_bounds = array<i64: 16, 256>}, {pipeline_mode = #tpu.pipeline_mode<synchronous>, transform_indices = @transform_1, window_bounds = array<i64: 256, 512>}, {pipeline_mode = #tpu.pipeline_mode<synchronous>, transform_indices = @transform_2, window_bounds = array<i64: 1, 512>}, {transform_indices = @transform_3, window_bounds = array<i64: 16, 512>}]} {
    %c0 = arith.constant 0 : index
    %c0_0 = arith.constant 0 : index
    %0 = vector.load %arg1[%c0, %c0_0] : memref<16x256xf32, #tpu.memory_space<vmem>>, vector<16x256xf32>
    %1 = arith.negf %0 : vector<16x256xf32>
    %2 = math.exp %1 : vector<16x256xf32>
    %cst = arith.constant 1.000000e+00 : f32
    %3 = vector.broadcast %cst : f32 to vector<16x256xf32>
    %4 = arith.addf %3, %2 : vector<16x256xf32>
    %5 = arith.divf %3, %4 : vector<16x256xf32>
    %6 = arith.truncf %5 : vector<16x256xf32> to vector<16x256xbf16>
    %c0_1 = arith.constant 0 : index
    %c0_2 = arith.constant 0 : index
    %7 = vector.load %arg2[%c0_1, %c0_2] : memref<256x512xbf16, #tpu.memory_space<vmem>>, vector<256x512xbf16>
    %cst_3 = arith.constant dense<0.000000e+00> : vector<16x512xf32>
    %8 = tpu.matmul %6, %7, %cst_3 {dimension_numbers = #tpu.dot_dimension_numbers<[1], [0], [0], [1], [0, 0, 1, 1], [], []>} : vector<16x256xbf16>, vector<256x512xbf16>, vector<16x512xf32> -> vector<16x512xf32>
    %c0_4 = arith.constant 0 : index
    %c0_5 = arith.constant 0 : index
    %9 = vector.load %arg3[%c0_4, %c0_5] : memref<1x512xf32, #tpu.memory_space<vmem>>, vector<1x512xf32>
    %10 = vector.broadcast %9 : vector<1x512xf32> to vector<16x512xf32>
    %11 = arith.addf %8, %10 : vector<16x512xf32>
    %12 = vector.extract_strided_slice %11 {offsets = [0, 0], sizes = [16, 256], strides = [1, 1]} : vector<16x512xf32> to vector<16x256xf32>
    %c0_6 = arith.constant 0 : index
    %c0_7 = arith.constant 0 : index
    %13 = vector.load %arg4[%c0_6, %c0_7] : memref<16x512xf32, #tpu.memory_space<vmem>>, vector<16x256xf32>
    tpu.vector_store %arg4[%c0_6, %c0_7], %12 {strides = array<i32>} : memref<16x512xf32, #tpu.memory_space<vmem>>, vector<16x256xf32>,
    %14 = vector.extract_strided_slice %11 {offsets = [0, 256], sizes = [16, 256], strides = [1, 1]} : vector<16x512xf32> to vector<16x256xf32>
    %cst_8 = arith.constant 2.000000e+01 : f32
    %15 = vector.broadcast %cst_8 : f32 to vector<16x256xf32>
    %16 = arith.cmpf ogt, %14, %15 : vector<16x256xf32>
    %cst_9 = arith.constant 2.000000e+01 : f32
    %17 = vector.broadcast %cst_9 : f32 to vector<16x256xf32>
    %18 = arith.minimumf %14, %17 : vector<16x256xf32>
    %19 = math.exp %18 : vector<16x256xf32>
    %20 = math.log1p %19 : vector<16x256xf32>
    %21 = arith.select %16, %14, %20 : vector<16x256xi1>, vector<16x256xf32>
    %c0_10 = arith.constant 0 : index
    %c256 = arith.constant 256 : index
    %22 = vector.load %arg4[%c0_10, %c256] : memref<16x512xf32, #tpu.memory_space<vmem>>, vector<16x256xf32>
    tpu.vector_store %arg4[%c0_10, %c256], %21 {strides = array<i32>} : memref<16x512xf32, #tpu.memory_space<vmem>>, vector<16x256xf32>,
    return
  }
  func.func @transform_0(%arg0: i32) -> (i32, i32) {
    %c0_i32 = arith.constant 0 : i32
    %c0_i32_0 = arith.constant 0 : i32
    return %arg0, %c0_i32 : i32, i32
  }
  func.func @transform_1(%arg0: i32) -> (i32, i32) {
    %c0_i32 = arith.constant 0 : i32
    %c0_i32_0 = arith.constant 0 : i32
    %c0_i32_1 = arith.constant 0 : i32
    return %c0_i32, %c0_i32_0 : i32, i32
  }
  func.func @transform_2(%arg0: i32) -> (i32, i32) {
    %c0_i32 = arith.constant 0 : i32
    %c0_i32_0 = arith.constant 0 : i32
    %c0_i32_1 = arith.constant 0 : i32
    return %c0_i32, %c0_i32_0 : i32, i32
  }
  func.func @transform_3(%arg0: i32) -> (i32, i32) {
    %c0_i32 = arith.constant 0 : i32
    %c0_i32_0 = arith.constant 0 : i32
    return %arg0, %c0_i32 : i32, i32
  }
}

</mosaic_0001>

<bundles_post_ra>
// kernel: tpu_custom_call.1
= control target key start
LH: loop header
LB: loop body
LE: loop exit
PB: predicated region body
PF: predicated region fallthrough
CT: control target
= control target key end

     0   :  { %8 = vsyncpa [#allocation3], 0  ;;  %s1008_s0 = inlined_call_operand.hbm [shape: f32[16,256], index: 0, kind: input, shape index: {}]   ;;  %s1009_s1 = inlined_call_operand.hbm [shape: bf16[256,512], index: 1, kind: input, shape index: {}]   ;;  %s1010_s2 = inlined_call_operand.hbm [shape: f32[1,512], index: 2, kind: input, shape index: {}]   ;;  %s1011_s3 = inlined_call_operand.hbm [shape: f32[16,512], index: 3, kind: output, shape index: {}]  }
   0x1   :  { %9 = vsyncpa [#allocation6], 0 }
   0x2   :  { %10 = vsyncpa [#allocation4], 0  ;;  %s948_s12 = smov [#allocation5]   ;;  %s949_s14 = smov [#allocation2]  }
   0x3   :  { %s28_s13 = sshll.u32 %s948_s12, 4  ;;  %s16_s15 = sshll.u32 %s949_s14, 4  ;;  %s29_s13 = int_to_ptr.vmem [resolvable:$true] %s28_s13  ;;  %s17_s15 = int_to_ptr.vmem [resolvable:$true] %s16_s15 }
   0x4   :  { %s870_s16 = scalar_lea.vmem %s29_s13, 8192  ;;  %p875_p1 = scmp.lt.s32.totalorder %s29_s13, %s29_s13 }
   0x5   :  { %p871_p0 = scmp.ne.s32.totalorder %s29_s13, %s870_s16  ;;  %p876_p2 = scmp.lt.s32.totalorder %s870_s16, %s870_s16 }
   0x7   :  { %p877_p3 = por %p876_p2, %p875_p1 }
   0x9   :  { %p878_p4 = pnand %p877_p3, %p871_p0 }
   0xb   :  { %881 = shalt.err (!%p878_p4)
}
   0xc   :  { %s950_s17 = smov 256   ;;  %s951_s18 = smov 16  }
   0xd   :  { %34 = dma.hbm_to_vmem [thread:$0]  %s1009_s1, 8192, %s29_s13, [#allocation6], %s950_s17, %s950_s17, %s951_s18  }
   0xe   :  { %s890_s21 = scalar_lea.vmem %s17_s15, 512  ;;  %p895_p6 = scmp.lt.s32.totalorder %s17_s15, %s17_s15 }
   0xf   :  { %p891_p5 = scmp.ne.s32.totalorder %s17_s15, %s890_s21  ;;  %p896_p7 = scmp.lt.s32.totalorder %s890_s21, %s890_s21 }
  0x11   :  { %p897_p8 = por %p896_p7, %p895_p6 }
  0x13   :  { %p898_p9 = pnand %p897_p8, %p891_p5 }
  0x15   :  { %901 = shalt.err (!%p898_p9)
}
  0x16   :  { %22 = dma.hbm_to_vmem [thread:$0]  %s1008_s0, 512, %s17_s15, [#allocation3], %s950_s17, %s950_s17, %s951_s18  }
  0x17   :  { %s952_s24 = smov [#allocation7]  }
  0x18   :  { %s41_s25 = sshll.u32 %s952_s24, 4  ;;  %s42_s25 = int_to_ptr.vmem [resolvable:$true] %s41_s25 }
  0x19   :  { %s910_s26 = scalar_lea.vmem %s42_s25, 64  ;;  %p915_p11 = scmp.lt.s32.totalorder %s42_s25, %s42_s25 }
  0x1a   :  { %p911_p10 = scmp.ne.s32.totalorder %s42_s25, %s910_s26  ;;  %p916_p12 = scmp.lt.s32.totalorder %s910_s26, %s910_s26 }
  0x1c   :  { %p917_p13 = por %p916_p12, %p915_p11 }
  0x1e   :  { %p918_p0 = pnand %p917_p13, %p911_p10 }
  0x20   :  { %921 = shalt.err (!%p918_p0)
}
  0x21   :  { %44 = dma.hbm_to_vmem [thread:$0]  %s1010_s2, 64, %s42_s25, [#allocation6]  }
  0x22   :  { %942 = dma.done.wait [#allocation3], 512  }
  0x23   :  { %943 = vsyncadd [#allocation3], 4294966784 }
  0x24   :  { %944 = dma.done.wait [#allocation6], 8256  }
  0x25   :  { %945 = vsyncadd [#allocation6], 4294959040  ;;  %v734_v0 = vld [vmem:[#allocation5 + $0xec] ss:$16 sps:$4 sm:$0xff]   ;;  %v736_v1 = vld [vmem:[#allocation5 + $0xe8] ss:$16 sps:$4 sm:$0xff]  }
  0x26   :  { %533 = vmatprep.subr.bf16.mxu1 %v734_v0  ;;  %v737_v2 = vld [vmem:[#allocation5 + $0xcc] ss:$16 sps:$4 sm:$0xff]   ;;  %v739_v3 = vld [vmem:[#allocation5 + $0xc8] ss:$16 sps:$4 sm:$0xff]   ;;  %v758_v8 = vld [vmem:[#allocation5 + $0xe4] ss:$16 sps:$4 sm:$0xff]  }
  0x27   :  { %534 = vmatpush1.bf16.msra.mxu1 %v736_v1  ;;  %v740_v4 = vld [vmem:[#allocation5 + $0xac] ss:$16 sps:$4 sm:$0xff]   ;;  %v742_v5 = vld [vmem:[#allocation5 + $0xa8] ss:$16 sps:$4 sm:$0xff]   ;;  %v762_v10 = vld [vmem:[#allocation5 + $0xe0] ss:$16 sps:$4 sm:$0xff]   ;;  %490 = vmatprep.subr.bf16.mxu0 %v758_v8 }
  0x28   :  { %535 = vmatprep.subr.bf16.mxu1 %v737_v2  ;;  %v743_v6 = vld [vmem:[#allocation5 + $0x8c] ss:$16 sps:$4 sm:$0xff]   ;;  %v745_v7 = vld [vmem:[#allocation5 + $0x88] ss:$16 sps:$4 sm:$0xff]   ;;  %491 = vmatpush1.bf16.msra.mxu0 %v762_v10  ;;  %v764_v11 = vld [vmem:[#allocation5 + $0xc4] ss:$16 sps:$4 sm:$0xff]  }
  0x29   :  { %v746_v9 = vld [vmem:[#allocation5 + $0x6c] ss:$16 sps:$4 sm:$0xff]   ;;  %v748_v12 = vld [vmem:[#allocation5 + $0x68] ss:$16 sps:$4 sm:$0xff]   ;;  %v768_v14 = vld [vmem:[#allocation5 + $0xc0] ss:$16 sps:$4 sm:$0xff]   ;;  %492 = vmatprep.subr.bf16.mxu0 %v764_v11 }
  0x2a   :  { %v749_v13 = vld [vmem:[#allocation5 + $0x4c] ss:$16 sps:$4 sm:$0xff]   ;;  %v770_v15 = vld [vmem:[#allocation5 + $0xa4] ss:$16 sps:$4 sm:$0xff]   ;;  %v751_v16 = vld [vmem:[#allocation5 + $0x48] ss:$16 sps:$4 sm:$0xff]  }
  0x2b   :  { %536 = vmatpush1.bf16.msra.mxu1 %v739_v3  ;;  %v774_v17 = vld [vmem:[#allocation5 + $0xa0] ss:$16 sps:$4 sm:$0xff]   ;;  %v776_v18 = vld [vmem:[#allocation5 + $0x84] ss:$16 sps:$4 sm:$0xff]   ;;  %v752_v19 = vld [vmem:[#allocation5 + $0x2c] ss:$16 sps:$4 sm:$0xff]  }
  0x2c   :  { %537 = vmatprep.subr.bf16.mxu1 %v740_v4  ;;  %493 = vmatpush1.bf16.msra.mxu0 %v768_v14  ;;  %v780_v20 = vld [vmem:[#allocation5 + $0x80] ss:$16 sps:$4 sm:$0xff]   ;;  %v754_v21 = vld [vmem:[#allocation5 + $0x28] ss:$16 sps:$4 sm:$0xff]   ;;  %v782_v22 = vld [vmem:[#allocation5 + $0x64] ss:$16 sps:$4 sm:$0xff]  }
  0x2d   :  { %494 = vmatprep.subr.bf16.mxu0 %v770_v15  ;;  %v755_v23 = vld [vmem:[#allocation5 + $0xc] ss:$16 sps:$4 sm:$0xff]   ;;  %v757_v24 = vld [vmem:[#allocation5 + $0x8] ss:$16 sps:$4 sm:$0xff]   ;;  %v786_v25 = vld [vmem:[#allocation5 + $0x60] ss:$16 sps:$4 sm:$0xff]  }
  0x2e   :  { %v788_v26 = vld [vmem:[#allocation5 + $0x44] ss:$16 sps:$4 sm:$0xff]   ;;  %v760_v27 = vld [vmem:[#allocation5 + $0x1ec] ss:$16 sps:$4 sm:$0xff]   ;;  %v792_v28 = vld [vmem:[#allocation5 + $0x40] ss:$16 sps:$4 sm:$0xff]  }
  0x2f   :  { %538 = vmatpush1.bf16.msra.mxu1 %v742_v5  ;;  %v763_v29 = vld [vmem:[#allocation5 + $0x1e8] ss:$16 sps:$4 sm:$0xff]   ;;  %v766_v30 = vld [vmem:[#allocation5 + $0x1cc] ss:$16 sps:$4 sm:$0xff]   ;;  %v794_v31 = vld [vmem:[#allocation5 + $0x24] ss:$16 sps:$4 sm:$0xff]  }
  0x30   :  { %539 = vmatprep.subr.bf16.mxu1 %v743_v6  ;;  %495 = vmatpush1.bf16.msra.mxu0 %v774_v17  ;;  %v55_v32 = vld [vmem:[#allocation2 + $0x8] sm:$0xff]  ;;  %v57_v33 = vld [vmem:[#allocation2 + $0x18] sm:$0xff]  ;;  %v54_v37 = vld [vmem:[#allocation2] sm:$0xff]  ;;  %s953_s0 = smov [#allocation8]  }
  0x31   :  { %496 = vmatprep.subr.bf16.mxu0 %v776_v18  ;;  %v769_v34 = vld [vmem:[#allocation5 + $0x1c8] ss:$16 sps:$4 sm:$0xff]   ;;  %v659_v35 = vmul.f32 -1.442695, %v55_v32  ;;  %v661_v36 = vmul.f32 -1.442695, %v57_v33 }
  0x32   :  { %v798_v38 = vld [vmem:[#allocation5 + $0x20] ss:$16 sps:$4 sm:$0xff]   ;;  %v658_v40 = vmul.f32 -1.442695, %v54_v37  ;;  %v800_v41 = vld [vmem:[#allocation5 + $0x4] ss:$16 sps:$4 sm:$0xff]  }
  0x33   :  { %540 = vmatpush1.bf16.msra.mxu1 %v745_v7  ;;  %v56_v39 = vld [vmem:[#allocation2 + $0x10] sm:$0xff]  ;;  %830 = vpow2.f32 %v659_v35  ;;  %v772_v43 = vld [vmem:[#allocation5 + $0x1ac] ss:$16 sps:$4 sm:$0xff]   ;;  %v775_v44 = vld [vmem:[#allocation5 + $0x1a8] ss:$16 sps:$4 sm:$0xff]   ;;  %s645_s2 = sshll.u32 %s953_s0, 4  ;;  %s646_s2 = int_to_ptr.vmem [resolvable:$true] %s645_s2 }
  0x34   :  { %541 = vmatprep.subr.bf16.mxu1 %v746_v9  ;;  %497 = vmatpush1.bf16.msra.mxu0 %v780_v20  ;;  %v660_v42 = vmul.f32 -1.442695, %v56_v39  ;;  %832 = vpow2.f32 %v661_v36  ;;  %v804_v45 = vld [vmem:[#allocation5] ss:$16 sps:$4 sm:$0xff]   ;;  %v806_v46 = vld [vmem:[#allocation5 + $0x1e4] ss:$16 sps:$4 sm:$0xff]   ;;  %p927_p2 = scmp.lt.s32.totalorder %s646_s2, %s646_s2 }
  0x35   :  { %498 = vmatprep.subr.bf16.mxu0 %v782_v22  ;;  %834 = vpow2.f32 %v658_v40  ;;  %v778_v47 = vld [vmem:[#allocation5 + $0x18c] ss:$16 sps:$4 sm:$0xff]   ;;  %v781_v48 = vld [vmem:[#allocation5 + $0x188] ss:$16 sps:$4 sm:$0xff]   ;;  %v808_v49 = vld [vmem:[#allocation5 + $0x1e0] ss:$16 sps:$4 sm:$0xff]   ;;  %v150_v22 = vlaneseq }
  0x36   :  { %836 = vpow2.f32 %v660_v42  ;;  %v809_v50 = vld [vmem:[#allocation5 + $0x1c4] ss:$16 sps:$4 sm:$0xff]   ;;  %v784_v51 = vld [vmem:[#allocation5 + $0x16c] ss:$16 sps:$4 sm:$0xff]   ;;  %v811_v52 = vld [vmem:[#allocation5 + $0x1c0] ss:$16 sps:$4 sm:$0xff]  }
  0x37   :  { %542 = vmatpush1.bf16.msra.mxu1 %v748_v12  ;;  %v787_v53 = vld [vmem:[#allocation5 + $0x168] ss:$16 sps:$4 sm:$0xff]   ;;  %v812_v54 = vld [vmem:[#allocation5 + $0x1a4] ss:$16 sps:$4 sm:$0xff]   ;;  %v790_v56 = vld [vmem:[#allocation5 + $0x14c] ss:$16 sps:$4 sm:$0xff]  }
  0x38   :  { %543 = vmatprep.subr.bf16.mxu1 %v749_v13  ;;  %499 = vmatpush1.bf16.msra.mxu0 %v786_v25  ;;  %v814_v61 = vld [vmem:[#allocation5 + $0x1a0] ss:$16 sps:$4 sm:$0xff]   ;;  %v793_v63 = vld [vmem:[#allocation5 + $0x148] ss:$16 sps:$4 sm:$0xff]   ;;  %v815_v1 = vld [vmem:[#allocation5 + $0x184] ss:$16 sps:$4 sm:$0xff]  }
  0x39   :  { %500 = vmatprep.subr.bf16.mxu0 %v788_v26  ;;  %v796_v2 = vld [vmem:[#allocation5 + $0x12c] ss:$16 sps:$4 sm:$0xff]   ;;  %v817_v4 = vld [vmem:[#allocation5 + $0x180] ss:$16 sps:$4 sm:$0xff]   ;;  %v799_v5 = vld [vmem:[#allocation5 + $0x128] ss:$16 sps:$4 sm:$0xff]  }
  0x3a   :  { %v818_v6 = vld [vmem:[#allocation5 + $0x164] ss:$16 sps:$4 sm:$0xff]   ;;  %v802_v7 = vld [vmem:[#allocation5 + $0x10c] ss:$16 sps:$4 sm:$0xff]   ;;  %v820_v8 = vld [vmem:[#allocation5 + $0x160] ss:$16 sps:$4 sm:$0xff]  }
  0x3b   :  { %544 = vmatpush1.bf16.msra.mxu1 %v751_v16  ;;  %v805_v9 = vld [vmem:[#allocation5 + $0x108] ss:$16 sps:$4 sm:$0xff]   ;;  %v821_v10 = vld [vmem:[#allocation5 + $0x144] ss:$16 sps:$4 sm:$0xff]   ;;  %v823_v11 = vld [vmem:[#allocation5 + $0x140] ss:$16 sps:$4 sm:$0xff]  }
  0x3c   :  { %545 = vmatprep.subr.bf16.mxu1 %v752_v19  ;;  %501 = vmatpush1.bf16.msra.mxu0 %v792_v28  ;;  %v824_v12 = vld [vmem:[#allocation5 + $0x124] ss:$16 sps:$4 sm:$0xff]   ;;  %v826_v17 = vld [vmem:[#allocation5 + $0x120] ss:$16 sps:$4 sm:$0xff]   ;;  %s922_s28 = scalar_lea.vmem %s646_s2, 1024 }
  0x3d   :  { %502 = vmatprep.subr.bf16.mxu0 %v794_v31  ;;  %v827_v19 = vld [vmem:[#allocation5 + $0x104] ss:$16 sps:$4 sm:$0xff]   ;;  %v148_v25 = vld [vmem:[#allocation7] sm:$0xf]  ;;  %p923_p1 = scmp.ne.s32.totalorder %s646_s2, %s922_s28  ;;  %p928_p3 = scmp.lt.s32.totalorder %s922_s28, %s922_s28 }
  0x3f   :  { %546 = vmatpush1.bf16.msra.mxu1 %v754_v21  ;;  %v829_v21 = vld [vmem:[#allocation5 + $0x100] ss:$16 sps:$4 sm:$0xff]   ;;  %p929_p4 = por %p928_p3, %p927_p2 }
  0x40   :  { %547 = vmatprep.subr.bf16.mxu1 %v755_v23  ;;  %503 = vmatpush1.bf16.msra.mxu0 %v798_v38  ;;  %v831_v55 = vpop.eup %830  ;;  %v151_v23 = vshrl.u32 %v150_v22, 7 }
  0x41   :  { %504 = vmatprep.subr.bf16.mxu0 %v800_v41  ;;  %v833_v57 = vpop.eup %832  ;;  %v71_v58 = vadd.f32 1.0, %v831_v55  ;;  %p930_p5 = pnand %p929_p4, %p923_p1 }
  0x42   :  { %v835_v59 = vpop.eup %834  ;;  %v73_v60 = vadd.f32 1.0, %v833_v57  ;;  %v164_v26 = vsub.s32 3, %v151_v23  ;;  %v156_v33 = vsub.s32 1, %v151_v23 }
  0x43   :  { %548 = vmatpush1.bf16.msra.mxu1 %v757_v24  ;;  %v837_v62 = vpop.eup %836  ;;  %838 = vrcp.f32 %v71_v58  ;;  %v70_v0 = vadd.f32 1.0, %v835_v59  ;;  %v160_v24 = vsub.s32 2, %v151_v23 }
  0x44   :  { %549 = vmatprep.subr.bf16.mxu1 %v760_v27  ;;  %505 = vmatpush1.bf16.msra.mxu0 %v804_v45  ;;  %840 = vrcp.f32 %v73_v60  ;;  %v72_v3 = vadd.f32 1.0, %v837_v62  ;;  %v165_v28 = vrot.slane %v148_v25, %v164_v26  ;;  %v157_v42 = vrot.slane %v148_v25, %v156_v33 }
  0x45   :  { %506 = vmatprep.subr.bf16.mxu0 %v806_v46  ;;  %842 = vrcp.f32 %v70_v0  ;;  %v161_v27 = vrot.slane %v148_v25, %v160_v24 }
  0x46   :  { %844 = vrcp.f32 %v72_v3 }
  0x47   :  { %550 = vmatpush2.bf16.msra.mxu1 %v763_v29 }
  0x48   :  { %551 = vmatprep.subr.bf16.mxu1 %v766_v30  ;;  %507 = vmatpush2.bf16.msra.mxu0 %v808_v49  ;;  %v152_v30 = vsub.s32 0, %v151_v23 }
  0x49   :  { %508 = vmatprep.subr.bf16.mxu0 %v809_v50 }
  0x4a   :  { %v153_v37 = vrot.slane %v148_v25, %v152_v30 }
  0x4b   :  { %552 = vmatpush2.bf16.msra.mxu1 %v769_v34 }
  0x4c   :  { %553 = vmatprep.subr.bf16.mxu1 %v772_v43  ;;  %509 = vmatpush2.bf16.msra.mxu0 %v811_v52 }
  0x4d   :  { %510 = vmatprep.subr.bf16.mxu0 %v812_v54 }
  0x4f   :  { %554 = vmatpush2.bf16.msra.mxu1 %v775_v44 }
  0x50   :  { %555 = vmatprep.subr.bf16.mxu1 %v778_v47  ;;  %511 = vmatpush2.bf16.msra.mxu0 %v814_v61  ;;  %v839_v13 = vpop.eup %838 }
  0x51   :  { %512 = vmatprep.subr.bf16.mxu0 %v815_v1  ;;  %v841_v14 = vpop.eup %840 }
  0x52   :  { %v843_v15 = vpop.eup %842  ;;  %v83_v16 = vpack.c.bf16 %v841_v14, %v839_v13 }
  0x53   :  { %556 = vmatpush2.bf16.msra.mxu1 %v781_v48  ;;  %v845_v18 = vpop.eup %844 }
  0x54   :  { %557 = vmatprep.subr.bf16.mxu1 %v784_v51  ;;  %513 = vmatpush2.bf16.msra.mxu0 %v817_v4  ;;  %v82_v20 = vpack.c.bf16 %v845_v18, %v843_v15 }
  0x55   :  { %514 = vmatprep.subr.bf16.mxu0 %v818_v6  ;;  %565 = vmatprep.mubr.bf16.mxu1 %v83_v16 }
  0x56   :  { %522 = vmatprep.mubr.bf16.mxu0 %v83_v16 }
  0x57   :  { %558 = vmatpush2.bf16.msra.mxu1 %v787_v53 }
  0x58   :  { %559 = vmatprep.subr.bf16.mxu1 %v790_v56  ;;  %515 = vmatpush2.bf16.msra.mxu0 %v820_v8 }
  0x59   :  { %516 = vmatprep.subr.bf16.mxu0 %v821_v10 }
  0x5b   :  { %560 = vmatpush2.bf16.msra.mxu1 %v793_v63 }
  0x5c   :  { %561 = vmatprep.subr.bf16.mxu1 %v796_v2  ;;  %517 = vmatpush2.bf16.msra.mxu0 %v823_v11 }
  0x5d   :  { %518 = vmatprep.subr.bf16.mxu0 %v824_v12 }
  0x5f   :  { %562 = vmatpush2.bf16.msra.mxu1 %v799_v5 }
  0x60   :  { %563 = vmatprep.subr.bf16.mxu1 %v802_v7  ;;  %519 = vmatpush2.bf16.msra.mxu0 %v826_v17 }
  0x61   :  { %520 = vmatprep.subr.bf16.mxu0 %v827_v19 }
  0x63   :  { %564 = vmatpush2.bf16.msra.mxu1 %v805_v9 }
  0x64   :  { %521 = vmatpush2.bf16.msra.mxu0 %v829_v21 }
  0x66   :  { %566 = vmatmul.mubr.bf16.vlgmr.msra.gmra.mxu1 %v82_v20 }
  0x67   :  { %523 = vmatmul.mubr.bf16.vlgmr.msra.gmra.mxu0 %v82_v20 }
 0x126   :  { %v567_v29 = vpop.f32.mrf.mxu1 }
 0x127   :  { %v985_v31 = vadd.f32 %v567_v29, %v161_v27  ;;  %v524_v45 = vpop.f32.mrf.mxu0 }
 0x128   :  { %v569_v32 = vpop.f32.mrf.mxu1  ;;  %v525_v47 = vadd.f32 %v524_v45, %v153_v37 }
 0x129   :  { %v584_v34 = vmin.f32 %v985_v31, 20.0  ;;  %v988_v35 = vadd.f32 %v569_v32, %v165_v28  ;;  %v526_v49 = vpop.f32.mrf.mxu0  ;;  %vm580_vm1 = vcmp.gt.f32.partialorder %v985_v31, 20.0 }
 0x12a   :  { %v571_v36 = vpop.f32.mrf.mxu1  ;;  %576 = vst [vmem:[#allocation8] sm:$0xff] %v525_v47  ;;  %v527_v51 = vadd.f32 %v526_v49, %v157_v42 }
 0x12b   :  { %v588_v38 = vmul.f32 1.442695, %v584_v34  ;;  %v585_v39 = vmin.f32 %v988_v35, 20.0  ;;  %v991_v40 = vadd.f32 %v571_v36, %v161_v27  ;;  %v528_v52 = vpop.f32.mrf.mxu0  ;;  %vm581_vm2 = vcmp.gt.f32.partialorder %v988_v35, 20.0 }
 0x12c   :  { %v573_v41 = vpop.f32.mrf.mxu1  ;;  %577 = vst [vmem:[#allocation8 + $0x8] sm:$0xff] %v527_v51  ;;  %v529_v54 = vadd.f32 %v528_v52, %v153_v37 }
 0x12d   :  { %846 = vpow2.f32 %v588_v38  ;;  %v590_v43 = vmul.f32 1.442695, %v585_v39  ;;  %v586_v44 = vmin.f32 %v991_v40, 20.0  ;;  %v994_v46 = vadd.f32 %v573_v41, %v165_v28  ;;  %v530_v55 = vpop.f32.mrf.mxu0 }
 0x12e   :  { %578 = vst [vmem:[#allocation8 + $0x20] sm:$0xff] %v529_v54  ;;  %v531_v56 = vadd.f32 %v530_v55, %v157_v42  ;;  %vm582_vm5 = vcmp.gt.f32.partialorder %v991_v40, 20.0 }
 0x12f   :  { %848 = vpow2.f32 %v590_v43  ;;  %v592_v48 = vmul.f32 1.442695, %v586_v44  ;;  %v587_v50 = vmin.f32 %v994_v46, 20.0  ;;  %vm583_vm7 = vcmp.gt.f32.partialorder %v994_v46, 20.0 }
 0x130   :  { %579 = vst [vmem:[#allocation8 + $0x28] sm:$0xff] %v531_v56 }
 0x131   :  { %850 = vpow2.f32 %v592_v48  ;;  %v594_v53 = vmul.f32 1.442695, %v587_v50 }
 0x133   :  { %852 = vpow2.f32 %v594_v53 }
 0x13a   :  { %v847_v57 = vpop.eup %846 }
 0x13b   :  { %v596_v58 = vadd.f32 1.0, %v847_v57  ;;  %v599_v1 = vmul.f32 -0.5, %v847_v57  ;;  %v602_v5 = vand.u32 2147483647, %v847_v57 }
 0x13c   :  { %v849_v59 = vpop.eup %848 }
 0x13d   :  { %854 = vlog2.f32 %v596_v58  ;;  %v605_v60 = vadd.f32 1.0, %v849_v59  ;;  %v608_v2 = vmul.f32 -0.5, %v849_v59  ;;  %v600_v3 = vadd.f32 1.0, %v599_v1 }
 0x13e   :  { %v851_v61 = vpop.eup %850  ;;  %v611_v8 = vand.u32 2147483647, %v849_v59  ;;  %vm603_vm0 = vcmp.lt.f32.partialorder %v602_v5, 0.0004427343 }
 0x13f   :  { %856 = vlog2.f32 %v605_v60  ;;  %v614_v62 = vadd.f32 1.0, %v851_v61  ;;  %v617_v4 = vmul.f32 -0.5, %v851_v61  ;;  %v609_v6 = vadd.f32 1.0, %v608_v2 }
 0x140   :  { %v853_v63 = vpop.eup %852  ;;  %v601_v11 = vmul.f32 %v847_v57, %v600_v3  ;;  %v620_v14 = vand.u32 2147483647, %v851_v61  ;;  %vm612_vm3 = vcmp.lt.f32.partialorder %v611_v8, 0.0004427343 }
 0x141   :  { %858 = vlog2.f32 %v614_v62  ;;  %v623_v0 = vadd.f32 1.0, %v853_v63  ;;  %v626_v9 = vmul.f32 -0.5, %v853_v63  ;;  %v618_v12 = vadd.f32 1.0, %v617_v4 }
 0x142   :  { %v610_v17 = vmul.f32 %v849_v59, %v609_v6  ;;  %v629_v24 = vand.u32 2147483647, %v853_v63  ;;  %vm621_vm4 = vcmp.lt.f32.partialorder %v620_v14, 0.0004427343 }
 0x143   :  { %860 = vlog2.f32 %v623_v0  ;;  %v627_v20 = vadd.f32 1.0, %v626_v9  ;;  %v619_v23 = vmul.f32 %v851_v61, %v618_v12 }
 0x144   :  { %vm630_vm6 = vcmp.lt.f32.partialorder %v629_v24, 0.0004427343 }
 0x145   :  { %v628_v30 = vmul.f32 %v853_v63, %v627_v20 }
 0x14a   :  { %v855_v7 = vpop.eup %854 }
 0x14b   :  { %v598_v10 = vmul.f32 0.6931472, %v855_v7 }
 0x14c   :  { %v857_v13 = vpop.eup %856 }
 0x14d   :  { %v604_v15 = vsel %vm603_vm0, %v601_v11, %v598_v10  ;;  %v607_v16 = vmul.f32 0.6931472, %v857_v13 }
 0x14e   :  { %v859_v18 = vpop.eup %858  ;;  %v632_v19 = vsel %vm580_vm1, %v985_v31, %v604_v15 }
 0x14f   :  { %636 = vst [vmem:[#allocation8 + $0x10] sm:$0xff] %v632_v19  ;;  %v613_v21 = vsel %vm612_vm3, %v610_v17, %v607_v16  ;;  %v616_v22 = vmul.f32 0.6931472, %v859_v18 }
 0x150   :  { %v633_v25 = vsel %vm581_vm2, %v988_v35, %v613_v21  ;;  %v861_v26 = vpop.eup %860 }
 0x151   :  { %637 = vst [vmem:[#allocation8 + $0x18] sm:$0xff] %v633_v25  ;;  %v622_v27 = vsel %vm621_vm4, %v619_v23, %v616_v22  ;;  %v625_v29 = vmul.f32 0.6931472, %v861_v26 }
 0x152   :  { %v634_v28 = vsel %vm582_vm5, %v991_v40, %v622_v27 }
 0x153   :  { %638 = vst [vmem:[#allocation8 + $0x30] sm:$0xff] %v634_v28  ;;  %v631_v31 = vsel %vm630_vm6, %v628_v30, %v625_v29 }
 0x154   :  { %v635_v32 = vsel %vm583_vm7, %v994_v46, %v631_v31 }
 0x155   :  { %639 = vst [vmem:[#allocation8 + $0x38] sm:$0xff] %v635_v32 }
 0x156   :  { %933 = shalt.err (!%p930_p5)
}
 0x157   :  { %s954_s29 = smov 512   ;;  %s955_s30 = smov 32  }
 0x158   :  { %651 = dma.vmem_to_hbm [thread:$0]  %s646_s2, 1024, %s1011_s3, [#allocation4], %s954_s29, %s954_s29, %s955_s30  }
 0x159   :  { %946 = dma.done.wait [#allocation4], 1024  }
 0x15a   :  { %947 = vsyncadd [#allocation4], 4294966272 }
 0x15b   :  { %655 = vsyncpa [#allocation3], 1 }
 0x15c   :  { %656 = vsyncpa [#allocation6], 1 }
 0x15d   :  { %657 = vsyncpa [#allocation4], 1 }

</bundles_post_ra>
